<compile_context>
chip_gen: v7x
topology: tpu7x:2x2x1
jax: 0.10.0
libtpu: 0.0.40
codegen_flags: <defaults>
</compile_context>

<pallas_src>
import functools

import jax
import jax.numpy as jnp
import numpy as np
from jax import lax
from jax.experimental import pallas as pl
from jax.experimental.pallas import tpu as pltpu


def _round_up(x, m):
    return ((x + m - 1) // m) * m


# ---------------- fused kernels: im2col-matmul + bias + LayerNorm ---------------- #

def _fused_single_kernel(p_ref, w_ref, b_ref, g_ref, bt_ref, o_ref, *, eps):
    # One MXU shot over the full contraction dim, then LayerNorm, all in VMEM.
    y = jnp.dot(p_ref[...], w_ref[...], preferred_element_type=jnp.float32)
    y = y + b_ref[...]                                    # (TM, C) f32
    mu = jnp.mean(y, axis=-1, keepdims=True)
    c = y - mu
    var = jnp.mean(c * c, axis=-1, keepdims=True)
    inv = lax.rsqrt(var + eps)                            # PyTorch LN eps=1e-5
    o_ref[...] = (c * inv * g_ref[...] + bt_ref[...]).astype(o_ref.dtype)


def _fused_tiled_kernel(p_ref, w_ref, b_ref, g_ref, bt_ref, o_ref, acc_ref, *, eps):
    k = pl.program_id(1)

    @pl.when(k == 0)
    def _init():
        acc_ref[...] = jnp.zeros_like(acc_ref)

    # bf16 x bf16 -> f32 accumulate on the MXU.
    acc_ref[...] += jnp.dot(p_ref[...], w_ref[...],
                            preferred_element_type=jnp.float32)

    @pl.when(k == pl.num_programs(1) - 1)
    def _finalize():
        y = acc_ref[...] + b_ref[...]                     # (TM, C) f32
        mu = jnp.mean(y, axis=-1, keepdims=True)
        c = y - mu
        var = jnp.mean(c * c, axis=-1, keepdims=True)
        inv = lax.rsqrt(var + eps)
        o_ref[...] = (c * inv * g_ref[...] + bt_ref[...]).astype(o_ref.dtype)


def conv_patch_ln_pallas(patches, w2d, bias, gamma, beta, *, eps=1e-5,
                         tm=512, tk=512, max_single_kd=4096):
    """LayerNorm(patches @ w2d + bias). patches: (R, Kd), w2d: (Kd, C) -> (R, C) f32."""
    R, Kd = patches.shape
    C = w2d.shape[1]

    patches = patches.astype(jnp.bfloat16)
    w2d = w2d.astype(jnp.bfloat16)
    bias = bias.reshape(1, C).astype(jnp.float32)
    gamma = gamma.reshape(1, C).astype(jnp.float32)
    beta = beta.reshape(1, C).astype(jnp.float32)

    tm = min(tm, _round_up(R, 8))
    Rp = _round_up(R, tm)
    if Rp != R:
        patches = jnp.pad(patches, ((0, Rp - R), (0, 0)))

    vec_bytes = 3 * C * 4  # bias / gamma / beta

    if Kd <= max_single_kd:
        # ---- fast path: single contraction step, full-extent K block ----
        grid = (Rp // tm,)
        vmem = 2 * (tm * Kd * 2 + Kd * C * 2 + vec_bytes + tm * C * 4)
        out = pl.pallas_call(
            functools.partial(_fused_single_kernel, eps=eps),
            grid=grid,
            in_specs=[
                pl.BlockSpec((tm, Kd), lambda i: (i, 0)),   # patches tile
                pl.BlockSpec((Kd, C), lambda i: (0, 0)),    # full weight (constant)
                pl.BlockSpec((1, C), lambda i: (0, 0)),     # conv bias
                pl.BlockSpec((1, C), lambda i: (0, 0)),     # LN gamma
                pl.BlockSpec((1, C), lambda i: (0, 0)),     # LN beta
            ],
            out_specs=pl.BlockSpec((tm, C), lambda i: (i, 0)),
            out_shape=jax.ShapeDtypeStruct((Rp, C), jnp.float32),
            compiler_params=pltpu.CompilerParams(
                dimension_semantics=("parallel",),
                vmem_limit_bytes=int(min(vmem + (16 << 20), 48 << 20))),
        )(patches, w2d, bias, gamma, beta)
        return out[:R]

    # ---- fallback: K-tiled accumulation for very large contraction dims ----
    tk = min(tk, _round_up(Kd, 128))
    Kp = _round_up(Kd, tk)
    if Kp != Kd:
        patches = jnp.pad(patches, ((0, 0), (0, Kp - Kd)))
        w2d = jnp.pad(w2d, ((0, Kp - Kd), (0, 0)))

    grid = (Rp // tm, Kp // tk)
    vmem = 2 * (tm * tk * 2 + tk * C * 2 + vec_bytes + tm * C * 4) + tm * C * 4
    out = pl.pallas_call(
        functools.partial(_fused_tiled_kernel, eps=eps),
        grid=grid,
        in_specs=[
            pl.BlockSpec((tm, tk), lambda i, k: (i, k)),   # patches tile
            pl.BlockSpec((tk, C), lambda i, k: (k, 0)),    # weight K-slab
            pl.BlockSpec((1, C), lambda i, k: (0, 0)),     # conv bias
            pl.BlockSpec((1, C), lambda i, k: (0, 0)),     # LN gamma
            pl.BlockSpec((1, C), lambda i, k: (0, 0)),     # LN beta
        ],
        out_specs=pl.BlockSpec((tm, C), lambda i, k: (i, 0)),
        out_shape=jax.ShapeDtypeStruct((Rp, C), jnp.float32),
        scratch_shapes=[pltpu.VMEM((tm, C), jnp.float32)],
        compiler_params=pltpu.CompilerParams(
            dimension_semantics=("parallel", "arbitrary"),
            vmem_limit_bytes=int(min(vmem + (16 << 20), 48 << 20))),
    )(patches, w2d, bias, gamma, beta)
    return out[:R]


# ------------------------------ im2col (JAX glue) ------------------------------ #

def _im2col(x_nchw, K, S, P):
    """(B,Cin,H,W) -> patches (B*Ho*Wo, K*K*Cin) ordered (kh, kw, cin)."""
    B, Cin, H, W = x_nchw.shape
    x = jnp.transpose(x_nchw, (0, 2, 3, 1))                     # NHWC
    x = jnp.pad(x, ((0, 0), (P, P), (P, P), (0, 0)))
    Ho = (H + 2 * P - K) // S + 1
    Wo = (W + 2 * P - K) // S + 1
    cols = []
    for dh in range(K):
        for dw in range(K):
            cols.append(lax.slice(
                x, (0, dh, dw, 0),
                (B, dh + (Ho - 1) * S + 1, dw + (Wo - 1) * S + 1, Cin),
                (1, S, S, 1)))                                   # (B,Ho,Wo,Cin)
    patches = jnp.stack(cols, axis=3)                            # (B,Ho,Wo,K*K,Cin)
    return patches.reshape(B * Ho * Wo, K * K * Cin), Ho, Wo


# ------------------------------- module wrapper -------------------------------- #

def init_params(key, in_chans, embed_dim, patch_size):
    k0, k1 = jax.random.split(key)
    s = 0.05
    return {
        # nn.Conv2d weight layout: (out, in, kh, kw) = OIHW
        "proj_w": jax.random.normal(
            k0, (embed_dim, in_chans, patch_size, patch_size), jnp.float32) * s,
        "proj_b": jax.random.normal(k1, (embed_dim,), jnp.float32) * s,
        "ln_g": jnp.ones((embed_dim,), jnp.float32),
        "ln_b": jnp.zeros((embed_dim,), jnp.float32),
    }


def overlap_patch_embed_forward(params, x, *, patch_size, stride, **pallas_kwargs):
    """x: (B, Cin, H, W). Returns (tokens (B, Ho*Wo, embed_dim), Ho, Wo)."""
    K, S = patch_size, stride
    P = patch_size // 2
    Cout, Cin = params["proj_w"].shape[:2]
    # Cast once, before im2col, so the im2col intermediate is half the HBM bytes.
    patches, Ho, Wo = _im2col(x.astype(jnp.bfloat16), K, S, P)
    # OIHW -> (kh, kw, cin, cout) flattened: matches the im2col patch ordering.
    w2d = jnp.transpose(params["proj_w"], (2, 3, 1, 0)).reshape(K * K * Cin, Cout)
    y = conv_patch_ln_pallas(patches, w2d, params["proj_b"],
                             params["ln_g"], params["ln_b"], **pallas_kwargs)
    B = x.shape[0]
    return y.reshape(B, Ho * Wo, Cout), Ho, Wo


# ------------------------------ pure-JAX reference ------------------------------ #

def reference_forward(params, x, *, patch_size, stride):
    P = patch_size // 2
    y = lax.conv_general_dilated(
        x, params["proj_w"], window_strides=(stride, stride),
        padding=((P, P), (P, P)),
        dimension_numbers=("NCHW", "OIHW", "NCHW"))
    y = y + params["proj_b"][None, :, None, None]
    B, C, Ho, Wo = y.shape
    y = jnp.transpose(y, (0, 2, 3, 1)).reshape(B, Ho * Wo, C)
    mu = y.mean(-1, keepdims=True)
    var = ((y - mu) ** 2).mean(-1, keepdims=True)
    y = (y - mu) * lax.rsqrt(var + 1e-5) * params["ln_g"] + params["ln_b"]
    return y, Ho, Wo


# ------------------------------------- main ------------------------------------- #

if __name__ == "__main__":
    configs = [
        # (B, Cin, H, W, patch_size, stride, embed_dim, extra_pallas_kwargs)
        (2, 3, 16, 16, 7, 4, 32, {}),                               # fast path
        (2, 32, 8, 8, 3, 2, 64, {}),                                # fast path
        (2, 32, 8, 8, 3, 2, 64, {"max_single_kd": 0, "tk": 128}),   # exercise K-tiled path
    ]
    key = jax.random.PRNGKey(0)
    for cfg in configs:
        B, Cin, H, W, K, S, E, extra = cfg
        key, kp, kx = jax.random.split(key, 3)
        params = init_params(kp, Cin, E, K)
        x = jax.random.normal(kx, (B, Cin, H, W), jnp.float32)

        out, h, w = overlap_patch_embed_forward(params, x, patch_size=K, stride=S,
                                                **extra)
        out = jax.block_until_ready(out)

        out_ref, h_ref, w_ref = reference_forward(params, x, patch_size=K, stride=S)
        assert (h, w) == (h_ref, w_ref), (h, w, h_ref, w_ref)
        # bf16 MXU operands with f32 accumulation -> slightly looser tolerance.
        np.testing.assert_allclose(np.asarray(out), np.asarray(out_ref),
                                   rtol=2e-2, atol=2e-2)

    print("KERNEL_OK")
</pallas_src>

<mosaic_0001>
module attributes {stable_mosaic.version = 11 : i64} {
  func.func @_fused_single_kernel(%arg0: i32, %arg1: memref<32x147xbf16, #tpu.memory_space<vmem>>, %arg2: memref<147x32xbf16, #tpu.memory_space<vmem>>, %arg3: memref<1x32xf32, #tpu.memory_space<vmem>>, %arg4: memref<1x32xf32, #tpu.memory_space<vmem>>, %arg5: memref<1x32xf32, #tpu.memory_space<vmem>>, %arg6: memref<32x32xf32, #tpu.memory_space<vmem>>) attributes {dimension_semantics = [#tpu.dimension_semantics<parallel>], iteration_bounds = array<i64: 1>, scalar_prefetch = 0 : i64, scratch_operands = 0 : i64, tpu.core_type = #tpu.core_type<tc>, window_params = [{transform_indices = @transform_0, window_bounds = array<i64: 32, 147>}, {pipeline_mode = #tpu.pipeline_mode<synchronous>, transform_indices = @transform_1, window_bounds = array<i64: 147, 32>}, {pipeline_mode = #tpu.pipeline_mode<synchronous>, transform_indices = @transform_2, window_bounds = array<i64: 1, 32>}, {pipeline_mode = #tpu.pipeline_mode<synchronous>, transform_indices = @transform_3, window_bounds = array<i64: 1, 32>}, {pipeline_mode = #tpu.pipeline_mode<synchronous>, transform_indices = @transform_4, window_bounds = array<i64: 1, 32>}, {transform_indices = @transform_5, window_bounds = array<i64: 32, 32>}]} {
    %c0 = arith.constant 0 : index
    %c0_0 = arith.constant 0 : index
    %0 = vector.load %arg1[%c0, %c0_0] : memref<32x147xbf16, #tpu.memory_space<vmem>>, vector<32x147xbf16>
    %c0_1 = arith.constant 0 : index
    %c0_2 = arith.constant 0 : index
    %1 = vector.load %arg2[%c0_1, %c0_2] : memref<147x32xbf16, #tpu.memory_space<vmem>>, vector<147x32xbf16>
    %cst = arith.constant dense<0.000000e+00> : vector<32x32xf32>
    %2 = tpu.matmul %0, %1, %cst {dimension_numbers = #tpu.dot_dimension_numbers<[1], [0], [0], [1], [0, 0, 1, 1], [], []>} : vector<32x147xbf16>, vector<147x32xbf16>, vector<32x32xf32> -> vector<32x32xf32>
    %c0_3 = arith.constant 0 : index
    %c0_4 = arith.constant 0 : index
    %3 = vector.load %arg3[%c0_3, %c0_4] : memref<1x32xf32, #tpu.memory_space<vmem>>, vector<1x32xf32>
    %4 = vector.broadcast %3 : vector<1x32xf32> to vector<32x32xf32>
    %5 = arith.addf %2, %4 : vector<32x32xf32>
    %cst_5 = arith.constant dense<0.000000e+00> : vector<32xf32>
    %6 = vector.multi_reduction <add>, %5, %cst_5 [1] : vector<32x32xf32> to vector<32xf32>
    %7 = vector.shape_cast %6 : vector<32xf32> to vector<32x1xf32>
    %cst_6 = arith.constant 3.200000e+01 : f32
    %8 = vector.broadcast %cst_6 : f32 to vector<32x1xf32>
    %9 = arith.divf %7, %8 : vector<32x1xf32>
    %10 = vector.broadcast %9 : vector<32x1xf32> to vector<32x32xf32>
    %11 = arith.subf %5, %10 : vector<32x32xf32>
    %12 = arith.mulf %11, %11 : vector<32x32xf32>
    %cst_7 = arith.constant dense<0.000000e+00> : vector<32xf32>
    %13 = vector.multi_reduction <add>, %12, %cst_7 [1] : vector<32x32xf32> to vector<32xf32>
    %14 = vector.shape_cast %13 : vector<32xf32> to vector<32x1xf32>
    %cst_8 = arith.constant 3.200000e+01 : f32
    %15 = vector.broadcast %cst_8 : f32 to vector<32x1xf32>
    %16 = arith.divf %14, %15 : vector<32x1xf32>
    %cst_9 = arith.constant 9.99999974E-6 : f32
    %17 = vector.broadcast %cst_9 : f32 to vector<32x1xf32>
    %18 = arith.addf %16, %17 : vector<32x1xf32>
    %19 = math.rsqrt %18 : vector<32x1xf32>
    %20 = vector.broadcast %19 : vector<32x1xf32> to vector<32x32xf32>
    %21 = arith.mulf %11, %20 : vector<32x32xf32>
    %c0_10 = arith.constant 0 : index
    %c0_11 = arith.constant 0 : index
    %22 = vector.load %arg4[%c0_10, %c0_11] : memref<1x32xf32, #tpu.memory_space<vmem>>, vector<1x32xf32>
    %23 = vector.broadcast %22 : vector<1x32xf32> to vector<32x32xf32>
    %24 = arith.mulf %21, %23 : vector<32x32xf32>
    %c0_12 = arith.constant 0 : index
    %c0_13 = arith.constant 0 : index
    %25 = vector.load %arg5[%c0_12, %c0_13] : memref<1x32xf32, #tpu.memory_space<vmem>>, vector<1x32xf32>
    %26 = vector.broadcast %25 : vector<1x32xf32> to vector<32x32xf32>
    %27 = arith.addf %24, %26 : vector<32x32xf32>
    %c0_14 = arith.constant 0 : index
    %c0_15 = arith.constant 0 : index
    %28 = vector.load %arg6[%c0_14, %c0_15] : memref<32x32xf32, #tpu.memory_space<vmem>>, vector<32x32xf32>
    tpu.vector_store %arg6[%c0_14, %c0_15], %27 {strides = array<i32>} : memref<32x32xf32, #tpu.memory_space<vmem>>, vector<32x32xf32>,
    return
  }
  func.func @transform_0(%arg0: i32) -> (i32, i32) {
    %c0_i32 = arith.constant 0 : i32
    %c0_i32_0 = arith.constant 0 : i32
    return %arg0, %c0_i32 : i32, i32
  }
  func.func @transform_1(%arg0: i32) -> (i32, i32) {
    %c0_i32 = arith.constant 0 : i32
    %c0_i32_0 = arith.constant 0 : i32
    %c0_i32_1 = arith.constant 0 : i32
    return %c0_i32, %c0_i32_0 : i32, i32
  }
  func.func @transform_2(%arg0: i32) -> (i32, i32) {
    %c0_i32 = arith.constant 0 : i32
    %c0_i32_0 = arith.constant 0 : i32
    %c0_i32_1 = arith.constant 0 : i32
    return %c0_i32, %c0_i32_0 : i32, i32
  }
  func.func @transform_3(%arg0: i32) -> (i32, i32) {
    %c0_i32 = arith.constant 0 : i32
    %c0_i32_0 = arith.constant 0 : i32
    %c0_i32_1 = arith.constant 0 : i32
    return %c0_i32, %c0_i32_0 : i32, i32
  }
  func.func @transform_4(%arg0: i32) -> (i32, i32) {
    %c0_i32 = arith.constant 0 : i32
    %c0_i32_0 = arith.constant 0 : i32
    %c0_i32_1 = arith.constant 0 : i32
    return %c0_i32, %c0_i32_0 : i32, i32
  }
  func.func @transform_5(%arg0: i32) -> (i32, i32) {
    %c0_i32 = arith.constant 0 : i32
    %c0_i32_0 = arith.constant 0 : i32
    return %arg0, %c0_i32 : i32, i32
  }
}

</mosaic_0001>

<bundles_post_ra>
// kernel: tpu_custom_call.1
= control target key start
LH: loop header
LB: loop body
LE: loop exit
PB: predicated region body
PF: predicated region fallthrough
CT: control target
= control target key end

     0   :  { %v378_v1 = vmov 0   ;;  %vm127_vm0 = vcmask 154624   ;;  %s488_s0 = inlined_call_operand.vmem [shape: bf16[32,147], index: 0, kind: input, shape index: {}]   ;;  %s489_s1 = inlined_call_operand.vmem [shape: bf16[147,32], index: 1, kind: input, shape index: {}]   ;;  %s490_s2 = inlined_call_operand.vmem [shape: f32[1,32], index: 2, kind: input, shape index: {}]   ;;  %s491_s3 = inlined_call_operand.vmem [shape: f32[1,32], index: 3, kind: input, shape index: {}]   ;;  %s492_s4 = inlined_call_operand.vmem [shape: f32[1,32], index: 4, kind: input, shape index: {}]   ;;  %s493_s5 = inlined_call_operand.hbm [shape: f32[32,32], index: 5, kind: output, shape index: {}]  }
   0x1   :  { %v330_v0 = vld [vmem:[%s489_s1] sm:$0xff]   ;;  %141 = vmatprep.subr.bf16.mxu0 %v378_v1  ;;  %305 = vmatprep.subr.bf16.mxu1 %v378_v1  ;;  %v331_v2 = vld [vmem:[%s489_s1 + $0x8] sm:$0xff]   ;;  %v332_v3 = vld [vmem:[%s489_s1 + $0x10] sm:$0xff]  }
   0x2   :  { %142 = vmatpush1.bf16.msra.mxu0 %v330_v0  ;;  %315 = vmatpush1.bf16.msra.mxu1 %v330_v0  ;;  %v333_v4 = vld [vmem:[%s489_s1 + $0x18] sm:$0xff]   ;;  %v342_v5 = vld [vmem:[%s488_s0 + $0x4] ss:$8 sps:$4 sm:$0xff]  }
   0x3   :  { %143 = vmatprep.subr.bf16.mxu0 %v378_v1  ;;  %306 = vmatprep.subr.bf16.mxu1 %v378_v1  ;;  %v345_v6 = vld [vmem:[%s488_s0 + $0x14] ss:$8 sps:$4 sm:$0xff]  }
   0x4   :  { %301 = vmatprep.mubr.msk.bf16.mxu0 %vm127_vm0, %v342_v5 }
   0x6   :  { %144 = vmatpush1.bf16.msra.mxu0 %v331_v2  ;;  %316 = vmatpush1.bf16.msra.mxu1 %v331_v2 }
   0x7   :  { %145 = vmatprep.subr.bf16.mxu0 %v378_v1  ;;  %307 = vmatprep.subr.bf16.mxu1 %v378_v1 }
   0xa   :  { %146 = vmatpush1.bf16.msra.mxu0 %v332_v3  ;;  %317 = vmatpush1.bf16.msra.mxu1 %v332_v3 }
   0xb   :  { %147 = vmatprep.subr.bf16.mxu0 %v378_v1  ;;  %308 = vmatprep.subr.bf16.mxu1 %v378_v1 }
   0xc   :  { %10 = vsyncpa [#allocation3], 0  ;;  %v334_v7 = vld [vmem:[%s489_s1 + $0x20] sm:$0xff]   ;;  %302 = vmatprep.mubr.msk.bf16.mxu1 %vm127_vm0, %v345_v6  ;;  %v335_v8 = vld [vmem:[%s489_s1 + $0x28] sm:$0xff]   ;;  %vm134_vm1 = vcmask 1040384   ;;  %vm135_vm2 = vcmask 1041408  }
   0xd   :  { %v336_v9 = vld [vmem:[%s489_s1 + $0x30] sm:$0xff]   ;;  %v337_v10 = vld [vmem:[%s489_s1 + $0x38] sm:$0xff]   ;;  %v379_v11 = vmov 65535   ;;  %v338_v13 = vld [vmem:[%s489_s1 + $0x40] sm:$0xff]   ;;  %vm190_vm3 = vcmask 261120  }
   0xe   :  { %148 = vmatpush1.bf16.msra.mxu0 %v333_v4  ;;  %318 = vmatpush1.bf16.msra.mxu1 %v333_v4  ;;  %v136_v12 = vsel %vm134_vm1, 4294967295, %v379_v11  ;;  %v339_v14 = vld [vmem:[%s489_s1 + $0x48] ss:$0 sps:$4 sm:$0x33]   ;;  %v343_v18 = vld [vmem:[%s488_s0 + $0x10] ss:$8 sps:$4 sm:$0xff]  }
   0xf   :  { %149 = vmatprep.subr.bf16.mxu0 %v378_v1  ;;  %309 = vmatprep.subr.bf16.mxu1 %v378_v1  ;;  %v137_v15 = vsel %vm135_vm2, %v136_v12, 0  ;;  %v340_v17 = vld [vmem:[%s488_s0] ss:$8 sps:$4 sm:$0xff]  }
  0x10   :  { %v139_v16 = vand.u32 %v339_v14, %v137_v15  ;;  %v286_v19 = vld [vmem:[%s490_s2] ss:$0 sm:$0xff] }
  0x11   :  { %v303_v5 = vld [vmem:[%s491_s3] ss:$0 sm:$0xff]  ;;  %s380_s3 = smov [#allocation2]  }
  0x12   :  { %150 = vmatpush1.bf16.msra.mxu0 %v334_v7  ;;  %319 = vmatpush1.bf16.msra.mxu1 %v334_v7  ;;  %v304_v7 = vld [vmem:[%s492_s4] ss:$0 sm:$0xff]  ;;  %s275_s24 = sshll.u32 %s380_s3, 4  ;;  %s276_s24 = int_to_ptr.vmem [resolvable:$true] %s275_s24 }
  0x13   :  { %151 = vmatprep.subr.bf16.mxu0 %v378_v1  ;;  %310 = vmatprep.subr.bf16.mxu1 %v378_v1  ;;  %s354_s4 = scalar_lea.vmem %s276_s24, 512  ;;  %p359_p1 = scmp.lt.s32.totalorder %s276_s24, %s276_s24 }
  0x14   :  { %p355_p0 = scmp.ne.s32.totalorder %s276_s24, %s354_s4  ;;  %p360_p2 = scmp.lt.s32.totalorder %s354_s4, %s354_s4 }
  0x16   :  { %152 = vmatpush1.bf16.msra.mxu0 %v335_v8  ;;  %320 = vmatpush1.bf16.msra.mxu1 %v335_v8  ;;  %p361_p3 = por %p360_p2, %p359_p1 }
  0x17   :  { %153 = vmatprep.subr.bf16.mxu0 %v378_v1  ;;  %311 = vmatprep.subr.bf16.mxu1 %v378_v1 }
  0x18   :  { %p362_p4 = pnand %p361_p3, %p355_p0 }
  0x1a   :  { %154 = vmatpush1.bf16.msra.mxu0 %v336_v9  ;;  %321 = vmatpush1.bf16.msra.mxu1 %v336_v9 }
  0x1b   :  { %155 = vmatprep.subr.bf16.mxu0 %v378_v1  ;;  %312 = vmatprep.subr.bf16.mxu1 %v378_v1 }
  0x1e   :  { %156 = vmatpush1.bf16.msra.mxu0 %v337_v10  ;;  %322 = vmatpush1.bf16.msra.mxu1 %v337_v10 }
  0x1f   :  { %157 = vmatprep.subr.bf16.mxu0 %v378_v1  ;;  %313 = vmatprep.subr.bf16.mxu1 %v378_v1 }
  0x22   :  { %158 = vmatpush1.bf16.msra.mxu0 %v338_v13  ;;  %323 = vmatpush1.bf16.msra.mxu1 %v338_v13 }
  0x23   :  { %159 = vmatprep.subr.bf16.mxu0 %v378_v1  ;;  %314 = vmatprep.subr.bf16.mxu1 %v378_v1 }
  0x26   :  { %160 = vmatpush1.bf16.msra.mxu0 %v139_v16  ;;  %324 = vmatpush1.bf16.msra.mxu1 %v139_v16 }
  0x29   :  { %174 = vmatmul.mubr.bf16.vlgmr.msra.gmra.mrb[0].mxu0 %v340_v17  ;;  %182 = vmatmul.mubr.bf16.vlgmr.msra.gmra.mrb[0].mxu1 %v343_v18 }
  0xfc   :  { %v175_v20 = vpop.f32.mrb[0].mxu0  ;;  %v183_v21 = vpop.f32.mrb[0].mxu1 }
  0xfd   :  { %v176_v22 = vadd.f32 %v286_v19, %v175_v20  ;;  %v184_v23 = vadd.f32 %v286_v19, %v183_v21  ;;  %v177_v24 = vpop.f32.mrb[1].mxu0  ;;  %v185_v25 = vpop.f32.mrb[1].mxu1 }
  0xfe   :  { %v178_v26 = vpop.f32.mrb[2].mxu0  ;;  %v186_v27 = vpop.f32.mrb[2].mxu1 }
  0xff   :  { %v179_v28 = vadd.f32 %v286_v19, %v178_v26  ;;  %v180_v29 = vpop.f32.mrb[3].mxu0  ;;  %v187_v30 = vadd.f32 %v286_v19, %v186_v27  ;;  %v188_v31 = vpop.f32.mrb[3].mxu1  ;;  %v197_v32 = vsel %vm190_vm3, %v184_v23, 0.0  ;;  %v191_v33 = vsel %vm190_vm3, %v176_v22, 0.0 }
 0x100   :  { %198 = vadd.xlane.f32.xlu1 %v197_v32  ;;  %192 = vadd.xlane.f32.xlu0 %v191_v33 }
 0x101   :  { %v200_v34 = vsel %vm190_vm3, %v187_v30, 0.0  ;;  %v194_v35 = vsel %vm190_vm3, %v179_v28, 0.0 }
 0x104   :  { %201 = vadd.xlane.f32.xlu1 %v200_v34  ;;  %195 = vadd.xlane.f32.xlu0 %v194_v35 }
 0x18d   :  { %v199_v36 = vpop.xlane.xlu1 %198  ;;  %v193_v37 = vpop.xlane.xlu0 %192 }
 0x18e   :  { %v206_v38 = vmul.f32 0.03125, %v199_v36  ;;  %v204_v39 = vmul.f32 0.03125, %v193_v37 }
 0x190   :  { %v210_v40 = vsub.f32 %v184_v23, %v206_v38  ;;  %v208_v41 = vsub.f32 %v176_v22, %v204_v39 }
 0x191   :  { %v202_v42 = vpop.xlane.xlu1 %201  ;;  %v196_v43 = vpop.xlane.xlu0 %195 }
 0x192   :  { %v207_v44 = vmul.f32 0.03125, %v202_v42  ;;  %v205_v45 = vmul.f32 0.03125, %v196_v43  ;;  %v212_v46 = vmul.f32 %v208_v41, %v208_v41  ;;  %v214_v50 = vmul.f32 %v210_v40, %v210_v40 }
 0x194   :  { %v211_v47 = vsub.f32 %v187_v30, %v207_v44  ;;  %v209_v48 = vsub.f32 %v179_v28, %v205_v45  ;;  %v216_v49 = vsel %vm190_vm3, %v212_v46, 0.0  ;;  %v222_v52 = vsel %vm190_vm3, %v214_v50, 0.0 }
 0x195   :  { %217 = vadd.xlane.f32.xlu0 %v216_v49 }
 0x196   :  { %v213_v51 = vmul.f32 %v209_v48, %v209_v48  ;;  %v215_v54 = vmul.f32 %v211_v47, %v211_v47 }
 0x198   :  { %v219_v53 = vsel %vm190_vm3, %v213_v51, 0.0  ;;  %v225_v55 = vsel %vm190_vm3, %v215_v54, 0.0 }
 0x199   :  { %223 = vadd.xlane.f32.xlu0 %v222_v52  ;;  %220 = vadd.xlane.f32.xlu1 %v219_v53 }
 0x19d   :  { %226 = vadd.xlane.f32.xlu1 %v225_v55 }
 0x222   :  { %v218_v56 = vpop.xlane.xlu0 %217 }
 0x223   :  { %v228_v57 = vmul.f32 0.03125, %v218_v56 }
 0x225   :  { %v232_v58 = vadd.f32 1e-05, %v228_v57 }
 0x226   :  { %v221_v59 = vpop.xlane.xlu1 %220  ;;  %v224_v60 = vpop.xlane.xlu0 %223 }
 0x227   :  { %346 = vrsqrt.f32 %v232_v58  ;;  %v229_v61 = vmul.f32 0.03125, %v221_v59  ;;  %v230_v62 = vmul.f32 0.03125, %v224_v60 }
 0x229   :  { %v233_v63 = vadd.f32 1e-05, %v229_v61  ;;  %v234_v0 = vadd.f32 1e-05, %v230_v62 }
 0x22a   :  { %v227_v1 = vpop.xlane.xlu1 %226 }
 0x22b   :  { %348 = vrsqrt.f32 %v233_v63  ;;  %v231_v2 = vmul.f32 0.03125, %v227_v1 }
 0x22c   :  { %350 = vrsqrt.f32 %v234_v0 }
 0x22d   :  { %v235_v3 = vadd.f32 1e-05, %v231_v2 }
 0x22f   :  { %352 = vrsqrt.f32 %v235_v3 }
 0x231   :  { %v347_v4 = vpop.eup %346 }
 0x232   :  { %v240_v6 = vmul.f32 %v347_v4, %v208_v41 }
 0x234   :  { %v251_v8 = vmul.f32 %v303_v5, %v240_v6 }
 0x235   :  { %v349_v9 = vpop.eup %348 }
 0x236   :  { %v351_v10 = vpop.eup %350  ;;  %v262_v11 = vadd.f32 %v304_v7, %v251_v8  ;;  %v241_v12 = vmul.f32 %v349_v9, %v209_v48 }
 0x237   :  { %v242_v13 = vmul.f32 %v351_v10, %v210_v40 }
 0x238   :  { %266 = vst.msk [vmem:[#allocation2] sm:$0xff] %vm190_vm3, %v262_v11  ;;  %v252_v14 = vmul.f32 %v303_v5, %v241_v12 }
 0x239   :  { %v353_v15 = vpop.eup %352  ;;  %v253_v16 = vmul.f32 %v303_v5, %v242_v13 }
 0x23a   :  { %v263_v17 = vadd.f32 %v304_v7, %v252_v14  ;;  %v243_v18 = vmul.f32 %v353_v15, %v211_v47 }
 0x23b   :  { %v264_v19 = vadd.f32 %v304_v7, %v253_v16 }
 0x23c   :  { %267 = vst.msk [vmem:[#allocation2 + $0x8] sm:$0xff] %vm190_vm3, %v263_v17  ;;  %v254_v20 = vmul.f32 %v303_v5, %v243_v18 }
 0x23d   :  { %268 = vst.msk [vmem:[#allocation2 + $0x10] sm:$0xff] %vm190_vm3, %v264_v19 }
 0x23e   :  { %v265_v21 = vadd.f32 %v304_v7, %v254_v20 }
 0x240   :  { %269 = vst.msk [vmem:[#allocation2 + $0x18] sm:$0xff] %vm190_vm3, %v265_v21 }
 0x241   :  { %365 = shalt.err (!%p362_p4)
}
 0x242   :  { %s366_s27 = scalar_lea.hbm %s493_s5, 512 }
 0x243   :  { %p367_p5 = scmp.ne.s32.totalorder %s493_s5, %s366_s27  ;;  %p370_p6 = scmp.lt.u32.totalorder %s366_s27, %s493_s5 }
 0x245   :  { %p372_p7 = pnand %p370_p6, %p367_p5 }
 0x247   :  { %375 = shalt.err (!%p372_p7)
}
 0x248   :  { %s381_s7 = smov 128   ;;  %s382_s8 = smov 8  }
 0x249   :  { %281 = dma.vmem_to_hbm [thread:$0]  %s276_s24, 512, %s493_s5, [#allocation3], %s381_s7, %s381_s7, %s382_s8  }
 0x24a   :  { %376 = dma.done.wait [#allocation3], 512  }
 0x24b   :  { %377 = vsyncadd [#allocation3], 4294966784 }
 0x24c   :  { %285 = vsyncpa [#allocation3], 1 }

</bundles_post_ra>
